<compile_context>
chip_gen: v5e
topology: v5e:2x2
jax: 0.10.0
libtpu: 0.0.40
codegen_flags: <defaults>
</compile_context>

<pallas_src>
import functools

import jax
import jax.numpy as jnp
from jax.experimental import pallas as pl
from jax.experimental.pallas import tpu as pltpu


def _round_up(x, m):
    return ((x + m - 1) // m) * m


def _critic_kernel(x_ref, w_ref, v_ref, o_ref, *, Cpad, H1, H2):
    """One batch tile of the Critic MLP. Parameters are packed, resident buffers."""
    HC = H1 + H2
    x = x_ref[...]                                # (TB, Cpad) = [state | action | 0]

    # Static, sublane-aligned views of the packed weight buffer.
    wc  = w_ref[0:Cpad, :]                        # (Cpad, HC): [[W1, 0], [0, W2b]]
    w2a = w_ref[Cpad:Cpad + H1, 0:H2]             # (H1, H2)
    bc  = v_ref[0:1, :]                           # (1, HC)  = [b1 | b2]
    w3  = v_ref[1:2, 0:H2]                        # (1, H2)  = W3 row
    b3  = v_ref[2:3, 0:1]                         # (1, 1)

    # Fused layer-1 + action-branch-of-layer-2 (single MXU push):
    #   t[:, :H1] = s@W1 + b1,   t[:, H1:] = a@W2b + b2
    t = jnp.dot(x, wc, preferred_element_type=jnp.float32) + bc   # (TB, HC)
    h1 = jnp.maximum(t[:, 0:H1], 0.0)

    # Layer 2: relu(h1@W2a + a@W2b + b2) == relu(concat([h1, a]) @ W2 + b2)
    h2 = jnp.maximum(
        jnp.dot(h1, w2a, preferred_element_type=jnp.float32) + t[:, H1:HC], 0.0)

    # Head: q = h2 @ w3 + b3, produced lane-dense as (1, TB) so the writeback is
    # an unmasked vst (the small h2 transpose goes to the XLU, which has slack).
    q = jnp.dot(w3, jnp.transpose(h2), preferred_element_type=jnp.float32) + b3
    o_ref[...] = q.astype(o_ref.dtype)


def critic_forward(state, action, params, *, block_batch=2048):
    """state: (B, S) f32, action: (B, A) f32 -> q: (B, 1) f32."""
    W, V, (S, A, H1, H2, Cpad) = params
    B = state.shape[0]

    # Batch tile selection: one big tile whenever the batch fits (grid-step
    # overhead dominates at these tiny feature widths); otherwise 128-aligned
    # tiles (keeps the lane-dense (1, TB) output block (8,128)-compliant) and a
    # 4096 cap so padded f32 VMEM buffers stay small even on v7x's 64 MiB VMEM.
    B8 = _round_up(B, 8)
    if B8 <= block_batch:
        TB = B8
    else:
        TB = _round_up(min(block_batch, 4096), 128)
    B_pad = pl.cdiv(B, TB) * TB
    num_tiles = B_pad // TB

    # Merge state+action (+ zero columns up to Cpad, + zero batch-pad rows) into
    # one activation stream -> a single input DMA per grid step.
    x = jnp.concatenate([state, action], axis=1)
    pad_cols = Cpad - (S + A)
    pad_rows = B_pad - B
    if pad_cols or pad_rows:
        x = jnp.pad(x, ((0, pad_rows), (0, pad_cols)))

    kernel = functools.partial(_critic_kernel, Cpad=Cpad, H1=H1, H2=H2)

    HC = H1 + H2
    flops = 2 * B_pad * (Cpad * HC + H1 * H2 + H2)
    bytes_accessed = 4 * (B_pad * Cpad + B_pad + W.size + V.size)

    out = pl.pallas_call(
        kernel,
        out_shape=jax.ShapeDtypeStruct((1, B_pad), jnp.float32),
        grid=(num_tiles,),
        in_specs=[
            pl.BlockSpec((TB, Cpad), lambda i: (i, 0)),   # activations: batch-tiled
            pl.BlockSpec(W.shape, lambda i: (0, 0)),      # packed weights: resident
            pl.BlockSpec(V.shape, lambda i: (0, 0)),      # biases + head row: resident
        ],
        out_specs=pl.BlockSpec((1, TB), lambda i: (0, i)),  # lane-dense q row
        compiler_params=pltpu.CompilerParams(
            dimension_semantics=("parallel",)),            # 2-TC sharding on v7x
        cost_estimate=pl.CostEstimate(
            flops=flops, transcendentals=0, bytes_accessed=bytes_accessed),
    )(x, W, V)

    return out[0, :B][:, None]


def make_params(key, state_size, action_size, h1, h2):
    """Deterministic synthetic init mirroring the module's uniform(-lim, lim) scheme.

    Returns the raw (unpacked) parameters used by the pure-JAX reference.
    """
    ks = jax.random.split(key, 6)

    def uni(k, shape, lim):
        return jax.random.uniform(k, shape, jnp.float32, -lim, lim)

    # Layer 1: Linear(state_size, h1); stored transposed as (in, out)
    lim1 = 1.0 / (h1 ** 0.5)
    w1 = uni(ks[0], (state_size, h1), lim1)
    b1 = uni(ks[1], (1, h1), lim1)

    # Layer 2: Linear(h1 + action_size, h2); stored transposed as (in, out)
    lim2 = 1.0 / (h2 ** 0.5)
    w2 = uni(ks[2], (h1 + action_size, h2), lim2)
    b2 = uni(ks[3], (1, h2), lim2)

    # Layer 3: Linear(h2, 1) with 'initial_weight' = (-3e-3, 3e-3)
    w3 = uni(ks[4], (h2, 1), 3e-3)
    b3 = uni(ks[5], (1, 1), 3e-3)

    return (w1, b1, w2, b2, w3, b3)


def pack_params(w1, b1, w2, b2, w3, b3):
    """Pack the 6 small parameter tensors into 2 VMEM-friendly resident buffers.

    W = [ Wc ; W2a ] where Wc = [[W1, 0], [0, W2b]] is (Cpad, H1+H2) and the W2a
    block starts at the sublane-aligned row offset Cpad (Cpad % 8 == 0).
    V rows: 0 = [b1 | b2], 1 = W3 row, 2 = [b3, 0, ...].
    """
    S, H1 = w1.shape
    H2 = w2.shape[1]
    A = w2.shape[0] - H1
    w2a, w2b = w2[:H1], w2[H1:]

    HC = H1 + H2
    Cpad = _round_up(S + A, 8)   # sublane-aligned start for the W2a block

    wc = jnp.zeros((Cpad, HC), jnp.float32)
    wc = wc.at[0:S, 0:H1].set(w1)
    wc = wc.at[S:S + A, H1:HC].set(w2b)
    w2a_p = jnp.pad(w2a, ((0, 0), (0, HC - H2)))
    W = jnp.concatenate([wc, w2a_p], axis=0)            # (Cpad + H1, HC)

    bc = jnp.concatenate([b1, b2], axis=1)               # (1, HC)
    w3_row = jnp.pad(w3.T, ((0, 0), (0, HC - H2)))       # (1, HC)
    b3_row = jnp.pad(b3, ((0, 0), (0, HC - 1)))          # (1, HC)
    V = jnp.concatenate([bc, w3_row, b3_row], axis=0)    # (3, HC)

    return W, V, (S, A, H1, H2, Cpad)


def reference_forward(state, action, raw):
    """Pure-JAX reference of the Critic forward (concat form), for checking."""
    w1, b1, w2, b2, w3, b3 = raw
    h1 = jnp.maximum(state @ w1 + b1, 0.0)
    x = jnp.concatenate([h1, action], axis=1)
    h2 = jnp.maximum(x @ w2 + b2, 0.0)
    return h2 @ w3 + b3


if __name__ == "__main__":
    # Small, module-consistent shapes: state_size=16, action_size=4, hidden 32.
    B, STATE, ACTION, H1, H2 = 64, 16, 4, 32, 32

    key = jax.random.PRNGKey(0)
    k_state, k_action, k_params, k_state2, k_action2 = jax.random.split(key, 5)

    state = jax.random.normal(k_state, (B, STATE), jnp.float32)
    action = jax.random.normal(k_action, (B, ACTION), jnp.float32)

    raw = make_params(k_params, STATE, ACTION, H1, H2)
    params = pack_params(*raw)

    # Default path: one large batch tile, single grid step.
    q = jax.block_until_ready(critic_forward(state, action, params))
    q_ref = reference_forward(state, action, raw)
    assert q.shape == (B, 1)
    assert jnp.allclose(q, q_ref, atol=1e-5, rtol=1e-5)

    # Multi-tile path: 3 pipelined, 128-row batch tiles (exercises the grid).
    B2 = 384
    state2 = jax.random.normal(k_state2, (B2, STATE), jnp.float32)
    action2 = jax.random.normal(k_action2, (B2, ACTION), jnp.float32)
    q2 = jax.block_until_ready(
        critic_forward(state2, action2, params, block_batch=128))
    q2_ref = reference_forward(state2, action2, raw)
    assert q2.shape == (B2, 1)
    assert jnp.allclose(q2, q2_ref, atol=1e-5, rtol=1e-5)

    print("KERNEL_OK")
</pallas_src>

<mosaic_0001>
module attributes {stable_mosaic.version = 11 : i64} {
  func.func @_critic_kernel(%arg0: i32, %arg1: memref<64x24xf32, #tpu.memory_space<vmem>>, %arg2: memref<56x64xf32, #tpu.memory_space<vmem>>, %arg3: memref<3x64xf32, #tpu.memory_space<vmem>>, %arg4: memref<1x64xf32, #tpu.memory_space<vmem>>) attributes {dimension_semantics = [#tpu.dimension_semantics<parallel>], iteration_bounds = array<i64: 1>, scalar_prefetch = 0 : i64, scratch_operands = 0 : i64, tpu.core_type = #tpu.core_type<tc>, window_params = [{transform_indices = @transform_0, window_bounds = array<i64: 64, 24>}, {pipeline_mode = #tpu.pipeline_mode<synchronous>, transform_indices = @transform_1, window_bounds = array<i64: 56, 64>}, {pipeline_mode = #tpu.pipeline_mode<synchronous>, transform_indices = @transform_2, window_bounds = array<i64: 3, 64>}, {transform_indices = @transform_3, window_bounds = array<i64: 1, 64>}]} {
    %c0 = arith.constant 0 : index
    %c0_0 = arith.constant 0 : index
    %0 = vector.load %arg1[%c0, %c0_0] : memref<64x24xf32, #tpu.memory_space<vmem>>, vector<64x24xf32>
    %c0_1 = arith.constant 0 : index
    %c0_2 = arith.constant 0 : index
    %1 = vector.load %arg2[%c0_1, %c0_2] : memref<56x64xf32, #tpu.memory_space<vmem>>, vector<24x64xf32>
    %c24 = arith.constant 24 : index
    %c0_3 = arith.constant 0 : index
    %2 = vector.load %arg2[%c24, %c0_3] : memref<56x64xf32, #tpu.memory_space<vmem>>, vector<32x32xf32>
    %c0_4 = arith.constant 0 : index
    %c0_5 = arith.constant 0 : index
    %3 = vector.load %arg3[%c0_4, %c0_5] : memref<3x64xf32, #tpu.memory_space<vmem>>, vector<1x64xf32>
    %c1 = arith.constant 1 : index
    %c0_6 = arith.constant 0 : index
    %4 = vector.load %arg3[%c1, %c0_6] : memref<3x64xf32, #tpu.memory_space<vmem>>, vector<1x32xf32>
    %c2 = arith.constant 2 : index
    %c0_7 = arith.constant 0 : index
    %5 = vector.load %arg3[%c2, %c0_7] : memref<3x64xf32, #tpu.memory_space<vmem>>, vector<1x1xf32>
    %cst = arith.constant dense<0.000000e+00> : vector<64x64xf32>
    %6 = tpu.matmul %0, %1, %cst {dimension_numbers = #tpu.dot_dimension_numbers<[1], [0], [0], [1], [0, 0, 1, 1], [], []>} : vector<64x24xf32>, vector<24x64xf32>, vector<64x64xf32> -> vector<64x64xf32>
    %7 = vector.broadcast %3 : vector<1x64xf32> to vector<64x64xf32>
    %8 = arith.addf %6, %7 : vector<64x64xf32>
    %9 = vector.extract_strided_slice %8 {offsets = [0, 0], sizes = [64, 32], strides = [1, 1]} : vector<64x64xf32> to vector<64x32xf32>
    %cst_8 = arith.constant 0.000000e+00 : f32
    %10 = vector.broadcast %cst_8 : f32 to vector<64x32xf32>
    %11 = arith.maximumf %9, %10 : vector<64x32xf32>
    %cst_9 = arith.constant dense<0.000000e+00> : vector<64x32xf32>
    %12 = tpu.matmul %11, %2, %cst_9 {dimension_numbers = #tpu.dot_dimension_numbers<[1], [0], [0], [1], [0, 0, 1, 1], [], []>} : vector<64x32xf32>, vector<32x32xf32>, vector<64x32xf32> -> vector<64x32xf32>
    %13 = vector.extract_strided_slice %8 {offsets = [0, 32], sizes = [64, 32], strides = [1, 1]} : vector<64x64xf32> to vector<64x32xf32>
    %14 = arith.addf %12, %13 : vector<64x32xf32>
    %cst_10 = arith.constant 0.000000e+00 : f32
    %15 = vector.broadcast %cst_10 : f32 to vector<64x32xf32>
    %16 = arith.maximumf %14, %15 : vector<64x32xf32>
    %17 = tpu.transpose %16, [1, 0] : vector<64x32xf32> -> vector<32x64xf32>
    %cst_11 = arith.constant dense<0.000000e+00> : vector<1x64xf32>
    %18 = tpu.matmul %4, %17, %cst_11 {dimension_numbers = #tpu.dot_dimension_numbers<[1], [0], [0], [1], [0, 0, 1, 1], [], []>} : vector<1x32xf32>, vector<32x64xf32>, vector<1x64xf32> -> vector<1x64xf32>
    %19 = vector.broadcast %5 : vector<1x1xf32> to vector<1x64xf32>
    %20 = arith.addf %18, %19 : vector<1x64xf32>
    %c0_12 = arith.constant 0 : index
    %c0_13 = arith.constant 0 : index
    %21 = vector.load %arg4[%c0_12, %c0_13] : memref<1x64xf32, #tpu.memory_space<vmem>>, vector<1x64xf32>
    tpu.vector_store %arg4[%c0_12, %c0_13], %20 {strides = array<i32>} : memref<1x64xf32, #tpu.memory_space<vmem>>, vector<1x64xf32>,
    return
  }
  func.func @transform_0(%arg0: i32) -> (i32, i32) {
    %c0_i32 = arith.constant 0 : i32
    %c0_i32_0 = arith.constant 0 : i32
    return %arg0, %c0_i32 : i32, i32
  }
  func.func @transform_1(%arg0: i32) -> (i32, i32) {
    %c0_i32 = arith.constant 0 : i32
    %c0_i32_0 = arith.constant 0 : i32
    %c0_i32_1 = arith.constant 0 : i32
    return %c0_i32, %c0_i32_0 : i32, i32
  }
  func.func @transform_2(%arg0: i32) -> (i32, i32) {
    %c0_i32 = arith.constant 0 : i32
    %c0_i32_0 = arith.constant 0 : i32
    %c0_i32_1 = arith.constant 0 : i32
    return %c0_i32, %c0_i32_0 : i32, i32
  }
  func.func @transform_3(%arg0: i32) -> (i32, i32) {
    %c0_i32 = arith.constant 0 : i32
    %c0_i32_0 = arith.constant 0 : i32
    return %c0_i32, %arg0 : i32, i32
  }
}

</mosaic_0001>

<bundles_post_ra>
// kernel: tpu_custom_call.1
= control target key start
LH: loop header
LB: loop body
LE: loop exit
PB: predicated region body
PF: predicated region fallthrough
CT: control target
= control target key end

     0   :  { %vm34_vm0 = vcmask 195584   ;;  %s453_s0 = inlined_call_operand.vmem [shape: f32[64,24], index: 0, kind: input, shape index: {}]   ;;  %s454_s1 = inlined_call_operand.vmem [shape: f32[56,64], index: 1, kind: input, shape index: {}]   ;;  %s455_s2 = inlined_call_operand.vmem [shape: f32[3,64], index: 2, kind: input, shape index: {}]   ;;  %s456_s3 = inlined_call_operand.hbm [shape: f32[1,64], index: 3, kind: output, shape index: {}]  }
   0x1   :  { %v25_v0 = vld [vmem:[%s454_s1 + $0x10] sm:$0xff]  ;;  %v24_v1 = vld [vmem:[%s454_s1 + $0x8] sm:$0xff]  ;;  %v23_v2 = vld [vmem:[%s454_s1] sm:$0xff] }
   0x2   :  { %72 = vmatpush.msra.mxu0 %v25_v0  ;;  %309 = vmatpush.msra.mxu3 %v25_v0  ;;  %v15_v3 = vld [vmem:[%s453_s0] sm:$0xff]  ;;  %v21_v4 = vld [vmem:[%s453_s0 + $0x30] sm:$0xff] }
   0x4   :  { %73 = vmatpush.msra.mxu0 %v24_v1  ;;  %310 = vmatpush.msra.mxu3 %v24_v1 }
   0x5   :  { %8 = vsyncpa [#allocation3], 0  ;;  %v16_v5 = vld [vmem:[%s453_s0 + $0x8] sm:$0xff]  ;;  %v22_v6 = vld [vmem:[%s453_s0 + $0x38] sm:$0xff]  ;;  %vm140_vm1 = vcmask 261120   ;;  %v349_v54 = vmov 0  }
   0x6   :  { %74 = vmatpush.msra.mxu0 %v23_v2  ;;  %311 = vmatpush.msra.mxu3 %v23_v2  ;;  %v29_v7 = vld [vmem:[%s454_s1 + $0x30] sm:$0xff]  ;;  %v18_v9 = vld [vmem:[%s453_s0 + $0x18] sm:$0xff]  ;;  %v19_v10 = vld [vmem:[%s453_s0 + $0x20] sm:$0xff]  ;;  %s350_s20 = smov [#allocation2]   ;;  %s275_s24 = sshll.u32 %s456_s3, 4  ;;  %vm266_vm2 = vcmask 516096   ;;  %s276_s24 = int_to_ptr.hbm [resolvable:$true] %s275_s24 }
   0x7   :  { %284 = vmatmul.msk.f32.vlgmr.msra.gmra.mxu0 %vm34_vm0, %v15_v3  ;;  %290 = vmatmul.msk.f32.vlgmr.msra.gmra.mxu3 %vm34_vm0, %v21_v4  ;;  %v17_v8 = vld [vmem:[%s453_s0 + $0x10] sm:$0xff]  ;;  %v20_v11 = vld [vmem:[%s453_s0 + $0x28] sm:$0xff]  ;;  %v27_v13 = vld [vmem:[%s454_s1 + $0x20] sm:$0xff]  ;;  %s273_s21 = sshll.u32 %s350_s20, 4  ;;  %s274_s21 = int_to_ptr.vmem [resolvable:$true] %s273_s21 }
   0x8   :  { %177 = vmatpush.msra.mxu1 %v29_v7  ;;  %312 = vmatpush.msrb.mxu3 %v29_v7  ;;  %v28_v12 = vld [vmem:[%s454_s1 + $0x28] sm:$0xff]  ;;  %v26_v14 = vld [vmem:[%s454_s1 + $0x18] sm:$0xff]  ;;  %v321_v15 = vld [vmem:[%s455_s2] ss:$0 sm:$0xff]  ;;  %s348_s1 = smov 96  }
   0x9   :  { %v32_v53 = vld [vmem:[%s455_s2 + $0x2] sm:$0x1]  ;;  %319 = vset.pattern.permute.xlu2 %v349_v54  ;;  %320 = vset.pattern.permute.xlu0 %v349_v54 }
   0xa   :  { %178 = vmatpush.msra.mxu1 %v28_v12  ;;  %313 = vmatpush.msrb.mxu3 %v28_v12 }
   0xc   :  { %179 = vmatpush.msra.mxu1 %v27_v13  ;;  %314 = vmatpush.msrb.mxu3 %v27_v13 }
   0xe   :  { %180 = vmatpush.msra.mxu1 %v26_v14  ;;  %315 = vmatpush.msrb.mxu3 %v26_v14 }
   0xf   :  { %285 = vmatmul.msk.f32.gmra.mxu0 %vm34_vm0, %v16_v5  ;;  %291 = vmatmul.msk.f32.gmra.mxu3 %vm34_vm0, %v22_v6 }
  0x17   :  { %286 = vmatmul.msk.f32.gmra.mxu0 %vm34_vm0, %v17_v8 }
  0x1f   :  { %287 = vmatmul.msk.f32.gmra.mxu0 %vm34_vm0, %v18_v9 }
  0x27   :  { %288 = vmatmul.msk.f32.gmra.mxu0 %vm34_vm0, %v19_v10  ;;  %v31_v10 = vld [vmem:[%s455_s2 + $0x1] sm:$0x1] }
  0x2f   :  { %289 = vmatmul.msk.f32.gmra.mxu0 %vm34_vm0, %v20_v11 }
  0x84   :  { %v76_v16 = vpop.f32.mrf.mxu0 }
  0x85   :  { %v77_v17 = vadd.f32 %v321_v15, %v76_v16 }
  0x87   :  { %v100_v18 = vmax.f32 %v77_v17, 0.0 }
  0x89   :  { %292 = vmatmul.msk.f32.vlgmr.msra.gmra.mxu1 %vm140_vm1, %v100_v18 }
  0x8a   :  { %v94_v19 = vpop.f32.mrf.mxu3 }
  0x8b   :  { %v95_v28 = vadd.f32 %v321_v15, %v94_v19 }
  0x8c   :  { %v79_v20 = vpop.f32.mrf.mxu0 }
  0x8d   :  { %v80_v21 = vadd.f32 %v321_v15, %v79_v20  ;;  %v106_v38 = vmax.f32 %v95_v28, 0.0 }
  0x8f   :  { %v101_v22 = vmax.f32 %v80_v21, 0.0 }
  0x91   :  { %293 = vmatmul.msk.f32.gmra.mxu1 %vm140_vm1, %v101_v22 }
  0x92   :  { %v97_v23 = vpop.f32.mrf.mxu3 }
  0x93   :  { %v98_v24 = vadd.f32 %v321_v15, %v97_v23 }
  0x94   :  { %v82_v25 = vpop.f32.mrf.mxu0 }
  0x95   :  { %v83_v26 = vadd.f32 %v321_v15, %v82_v25  ;;  %130 = vrot.lane.b32.xlu0 %v98_v24, %s348_s1  ;;  %v107_v39 = vmax.f32 %v98_v24, 0.0 }
  0x97   :  { %v102_v27 = vmax.f32 %v83_v26, 0.0 }
  0x99   :  { %294 = vmatmul.msk.f32.gmra.mxu1 %vm140_vm1, %v102_v27 }
  0x9c   :  { %v85_v29 = vpop.f32.mrf.mxu0 }
  0x9d   :  { %v86_v30 = vadd.f32 %v321_v15, %v85_v29  ;;  %128 = vrot.lane.b32.xlu0 %v95_v28, %s348_s1 }
  0x9f   :  { %v103_v31 = vmax.f32 %v86_v30, 0.0  ;;  %122 = vrot.lane.b32.xlu2 %v86_v30, %s348_s1 }
  0xa1   :  { %295 = vmatmul.msk.f32.gmra.mxu1 %vm140_vm1, %v103_v31 }
  0xa4   :  { %v88_v32 = vpop.f32.mrf.mxu0 }
  0xa5   :  { %v89_v33 = vadd.f32 %v321_v15, %v88_v32  ;;  %118 = vrot.lane.b32.xlu0 %v80_v21, %s348_s1 }
  0xa7   :  { %v104_v34 = vmax.f32 %v89_v33, 0.0  ;;  %120 = vrot.lane.b32.xlu2 %v83_v26, %s348_s1 }
  0xa9   :  { %296 = vmatmul.msk.f32.gmra.mxu1 %vm140_vm1, %v104_v34 }
  0xac   :  { %v91_v35 = vpop.f32.mrf.mxu0 }
  0xad   :  { %v92_v36 = vadd.f32 %v321_v15, %v91_v35 }
  0xaf   :  { %v105_v37 = vmax.f32 %v92_v36, 0.0  ;;  %126 = vrot.lane.b32.xlu1 %v92_v36, %s348_s1  ;;  %216 = vperm.xlu2 %319, %v32_v53  }
  0xb1   :  { %297 = vmatmul.msk.f32.vlgmr.msrb.gmra.mxu3 %vm140_vm1, %v105_v37 }
  0xb7   :  { %124 = vrot.lane.b32.xlu1 %v89_v33, %s348_s1 }
  0xb9   :  { %298 = vmatmul.msk.f32.gmra.mxu3 %vm140_vm1, %v106_v38 }
  0xbf   :  { %116 = vrot.lane.b32.xlu1 %v77_v17, %s348_s1 }
  0xc1   :  { %299 = vmatmul.msk.f32.gmra.mxu3 %vm140_vm1, %v107_v39 }
  0xf9   :  { %v123_v57 = vpop.permute.xlu2 %122 }
 0x101   :  { %v121_v0 = vpop.permute.xlu2 %120 }
 0x106   :  { %v182_v40 = vpop.f32.mrf.mxu1 }
 0x107   :  { %v131_v44 = vpop.permute.xlu0 %130 }
 0x109   :  { %v217_v11 = vpop.permute.xlu2 %216 }
 0x10e   :  { %v185_v41 = vpop.f32.mrf.mxu1 }
 0x10f   :  { %v129_v50 = vpop.permute.xlu0 %128 }
 0x116   :  { %v188_v43 = vpop.f32.mrf.mxu1 }
 0x117   :  { %v189_v1 = vadd.f32 %v188_v43, %v121_v0  ;;  %v119_v3 = vpop.permute.xlu0 %118 }
 0x118   :  { %v186_v5 = vadd.f32 %v185_v41, %v119_v3 }
 0x119   :  { %v208_v4 = vmax.f32 %v189_v1, 0.0 }
 0x11a   :  { %v207_v7 = vmax.f32 %v186_v5, 0.0 }
 0x11e   :  { %v191_v47 = vpop.f32.mrf.mxu1 }
 0x11f   :  { %v192_v62 = vadd.f32 %v191_v47, %v123_v57 }
 0x121   :  { %v127_v46 = vpop.permute.xlu1 %126  ;;  %v209_v2 = vmax.f32 %v192_v62, 0.0 }
 0x126   :  { %v194_v59 = vpop.f32.mrf.mxu1 }
 0x129   :  { %v125_v58 = vpop.permute.xlu1 %124 }
 0x12a   :  { %v195_v60 = vadd.f32 %v194_v59, %v125_v58 }
 0x12c   :  { %v210_v63 = vmax.f32 %v195_v60, 0.0 }
 0x131   :  { %v117_v6 = vpop.permute.xlu1 %116 }
 0x132   :  { %v183_v8 = vadd.f32 %v182_v40, %v117_v6 }
 0x134   :  { %v197_v42 = vpop.f32.mrf.mxu3  ;;  %v206_v9 = vmax.f32 %v183_v8, 0.0 }
 0x135   :  { %v198_v55 = vadd.f32 %v197_v42, %v127_v46 }
 0x137   :  { %v211_v61 = vmax.f32 %v198_v55, 0.0 }
 0x13c   :  { %v200_v45 = vpop.f32.mrf.mxu3 }
 0x13d   :  { %v201_v51 = vadd.f32 %v200_v45, %v129_v50 }
 0x13f   :  { %v212_v56 = vmax.f32 %v201_v51, 0.0 }
 0x144   :  { %v203_v48 = vpop.f32.mrf.mxu3 }
 0x145   :  { %v204_v49 = vadd.f32 %v203_v48, %v131_v44 }
 0x147   :  { %v213_v52 = vmax.f32 %v204_v49, 0.0 }
 0x149   :  { %300 = vmatpush.xpose.msk.msra.mxu2 %vm140_vm1, %v213_v52 }
 0x14d   :  { %301 = vmatpush.xpose.msk.msra.mxu2 %vm140_vm1, %v212_v56 }
 0x151   :  { %302 = vmatpush.xpose.msk.msra.mxu2 %vm140_vm1, %v211_v61 }
 0x155   :  { %303 = vmatpush.xpose.msk.msra.mxu2 %vm140_vm1, %v210_v63 }
 0x159   :  { %304 = vmatpush.xpose.msk.msra.mxu2 %vm140_vm1, %v209_v2 }
 0x15d   :  { %305 = vmatpush.xpose.msk.msra.mxu2 %vm140_vm1, %v208_v4 }
 0x161   :  { %306 = vmatpush.xpose.msk.msra.mxu2 %vm140_vm1, %v207_v7 }
 0x165   :  { %307 = vmatpush.xpose.msk.msra.mxu2 %vm140_vm1, %v206_v9 }
 0x168   :  { %308 = vmatmul.msk.f32.vlgmr.msra.gmra.mxu2 %vm140_vm1, %v31_v10 }
 0x1eb   :  { %v263_v12 = vpop.f32.mrf.mxu2 }
 0x1ec   :  { %v264_v13 = vadd.f32 %v263_v12, %v217_v11 }
 0x1ee   :  { %267 = vst.msk [vmem:[#allocation2] sm:$0x1] %vm266_vm2, %v264_v13 }
 0x1ef   :  { %278 = dma.vmem_to_hbm [thread:$0]  %s274_s21, 16, %s276_s24, [#allocation3]  }
 0x1f0   :  { %346 = dma.done.wait [#allocation3], 16  }
 0x1f1   :  { %347 = vsyncadd [#allocation3], 4294967280 }
 0x1f2   :  { %283 = vsyncpa [#allocation3], 1 }

</bundles_post_ra>
